<compile_context>
chip_gen: v5e
topology: v5e:2x2
jax: 0.10.0
libtpu: 0.0.40
codegen_flags: <defaults>
</compile_context>

<pallas_src>
import functools

import jax
import jax.numpy as jnp
from jax import lax
from jax.experimental import pallas as pl
from jax.experimental.pallas import tpu as pltpu


def _predictor_kernel(z_ref, w1_ref, w2_ref, cols_ref, bl_ref, tgt_ref, idt_ref,
                      sig_ref, loss_ref, acc_ref, *, mm_dtype):
    L = w1_ref.shape[1]

    # Packed per-feature columns (one DMA instead of three): [b1 | b2' | wl'].
    b1 = cols_ref[0:2 * L, :]            # (2L, 1)
    b2 = cols_ref[2 * L:3 * L, :]        # (L, 1)   BN1 already folded in
    wl = cols_ref[3 * L:4 * L, :]        # (L, 1)   BN2 already folded in

    # block 1: Linear -> LeakyReLU  (BN1 folded downstream; Dropout = eval identity)
    # z stays in native (B, L) layout; contracting the feature axis of both operands
    # puts the batch axis on lanes with no wrapper-side transpose.
    h = lax.dot_general(w1_ref[...].astype(mm_dtype), z_ref[...].astype(mm_dtype),
                        dimension_numbers=(((1,), (1,)), ((), ())),
                        preferred_element_type=jnp.float32) + b1        # (2L, B)
    h = jnp.where(h >= 0.0, h, 0.01 * h)                                # LeakyReLU(0.01)

    # block 2: Linear (BN1 folded into W2'/b2') -> LeakyReLU
    h = jnp.dot(w2_ref[...].astype(mm_dtype), h.astype(mm_dtype),
                preferred_element_type=jnp.float32) + b2                # (L, B)
    h = jnp.where(h >= 0.0, h, 0.01 * h)

    # last Linear(L, 1) with BN2 folded in: VPU multiply + cross-sublane reduce.
    # (An MXU matmul with N=1 would waste 127/255 output columns.)
    logits = jnp.sum(h * wl, axis=0, keepdims=True) + bl_ref[0]         # (1, B)

    # numerically-stable sigmoid; the divide goes to the EUP (approx vrcp).
    e = jnp.exp(-jnp.abs(logits))                                       # exp(-|x|) in (0, 1]
    inv = pl.reciprocal(1.0 + e, approx=True)
    sig = jnp.where(logits >= 0.0, inv, e * inv)                        # (1, B)
    sig_ref[...] = sig                                                  # lane-dense row store

    tgt = tgt_ref[...]                                                  # (1, B)
    idt = idt_ref[...]                                                  # (1, B), {0, 1}

    # BCE from logits: softplus(x) = -log(1 - sig), softplus(-x) = -log(sig).
    # Each term capped at 100 to mirror PyTorch's clamp(log, min=-100).
    sp_pos = jnp.maximum(logits, 0.0) + jnp.log(1.0 + e)                # softplus(logits)
    sp_neg = sp_pos - logits                                            # softplus(-logits)
    bce = tgt * jnp.minimum(sp_neg, 100.0) + (1.0 - tgt) * jnp.minimum(sp_pos, 100.0)
    bce = bce * idt                      # == BCE(sig*idt, tgt*idt) for idt in {0, 1}
    loss_ref[0] = jnp.sum(bce) / (jnp.sum(idt) + 1e-8)

    # accuracy over the labeled subset (0/0 -> NaN matches PyTorch when no labels exist)
    mask = (idt != 0.0).astype(jnp.float32)
    pred = (sig >= 0.5).astype(jnp.float32)
    correct = jnp.sum(mask * (tgt == pred).astype(jnp.float32))
    acc_ref[0] = correct / jnp.sum(mask)


def property_predictor_forward(z, prop_target, prop_idt, params, *,
                               matmul_dtype=jnp.float32):
    """z: (B, L) f32; prop_target / prop_idt: (B,) f32.  Returns (result_sig, loss, acc)."""
    B, L = z.shape
    T, Lw = params["wl"].shape            # PyTorch layout: (target_dim, latent_dim)
    assert T == 1 and Lw == L, "kernel specializes target_dim == 1 (torch.squeeze path)"
    eps = 1e-5

    # --- static parameter preprocessing (plain JAX): fold eval-mode BatchNorm1d
    # affines into the DOWNSTREAM linear layers so the kernel applies no BN at all. ---
    s1 = params["bn1_g"] * lax.rsqrt(params["bn1_rv"] + eps)            # (2L,)
    t1 = params["bn1_b"] - params["bn1_rm"] * s1
    s2 = params["bn2_g"] * lax.rsqrt(params["bn2_rv"] + eps)            # (L,)
    t2 = params["bn2_b"] - params["bn2_rm"] * s2

    w2f = params["w2"] * s1[None, :]                  # fold s1 into W2's columns
    b2f = params["b2"] + params["w2"] @ t1            # fold t1 into b2
    wlf = params["wl"][0] * s2                        # fold s2 into last-layer weights
    blf = params["bl"] + params["wl"][0] @ t2         # fold t2 into the scalar bias, (1,)

    # Pack the remaining small per-feature columns into a single VMEM input.
    cols = jnp.concatenate([params["b1"], b2f, wlf]).reshape(-1, 1)     # (4L, 1)

    # Pad the batch axis to a lane multiple so the (1, B) rows store unmasked.
    Bp = pl.cdiv(B, 128) * 128
    if Bp != B:
        z_p = jnp.pad(z, ((0, Bp - B), (0, 0)))
        tgt_p = jnp.pad(prop_target, (0, Bp - B))
        idt_p = jnp.pad(prop_idt, (0, Bp - B))        # zero idt -> padded rows masked out
    else:
        z_p, tgt_p, idt_p = z, prop_target, prop_idt

    vmem = pl.BlockSpec(memory_space=pltpu.MemorySpace.VMEM)
    smem = pl.BlockSpec(memory_space=pltpu.MemorySpace.SMEM)

    in_bytes = 4 * (z_p.size + params["w1"].size + w2f.size + cols.size + 1 + 2 * Bp)
    out_bytes = 4 * (Bp + 2)
    cost = pl.CostEstimate(
        flops=2 * Bp * (2 * L * L + L * 2 * L) + 16 * Bp,   # 2 matmuls + epilogue
        transcendentals=2 * Bp,                             # exp + log per sample
        bytes_accessed=in_bytes + out_bytes)

    kernel = functools.partial(_predictor_kernel, mm_dtype=matmul_dtype)

    sig, loss, acc = pl.pallas_call(
        kernel,
        in_specs=[
            vmem,   # z            (Bp, L)  native layout, no wrapper transpose
            vmem,   # w1           (2L, L)  PyTorch (out, in)
            vmem,   # w2'          (L, 2L)  BN1 folded
            vmem,   # packed cols  (4L, 1)  [b1 | b2' | wl']
            smem,   # bl' scalar   (1,)     BN2 folded
            vmem,   # prop_target  (1, Bp)
            vmem,   # prop_idt     (1, Bp)
        ],
        out_specs=[
            vmem,   # result_sig (1, Bp)
            smem,   # prop_loss  (1,)
            smem,   # accuracy   (1,)
        ],
        out_shape=[
            jax.ShapeDtypeStruct((1, Bp), jnp.float32),
            jax.ShapeDtypeStruct((1,), jnp.float32),
            jax.ShapeDtypeStruct((1,), jnp.float32),
        ],
        cost_estimate=cost,
    )(
        z_p,
        params["w1"],
        w2f,
        cols,
        blf,
        tgt_p.reshape(1, Bp),
        idt_p.reshape(1, Bp),
    )

    # torch.squeeze on (B, target_dim=1) -> (B,)
    return sig.reshape(Bp)[:B], loss[0], acc[0]


def init_params(key, latent_dim, target_dim):
    """Deterministic synthetic parameters in native PyTorch layer layouts."""
    ks = jax.random.split(key, 14)
    L, T = latent_dim, target_dim

    def linear(kw, kb, fan_in, fan_out):
        # nn.Linear: weight (out, in), bias (out,), U(-1/sqrt(fan_in), +1/sqrt(fan_in))
        bound = float(1.0 / (fan_in ** 0.5))
        w = jax.random.uniform(kw, (fan_out, fan_in), jnp.float32, -bound, bound)
        b = jax.random.uniform(kb, (fan_out,), jnp.float32, -bound, bound)
        return w, b

    w1, b1 = linear(ks[0], ks[1], L, 2 * L)
    w2, b2 = linear(ks[2], ks[3], 2 * L, L)
    wl, bl = linear(ks[4], ks[5], L, T)

    return dict(
        w1=w1, b1=b1, w2=w2, b2=b2, wl=wl, bl=bl,
        bn1_g=jax.random.uniform(ks[6], (2 * L,), jnp.float32, 0.5, 1.5),
        bn1_b=0.1 * jax.random.normal(ks[7], (2 * L,), jnp.float32),
        bn1_rm=0.1 * jax.random.normal(ks[8], (2 * L,), jnp.float32),
        bn1_rv=jax.random.uniform(ks[9], (2 * L,), jnp.float32, 0.5, 1.5),
        bn2_g=jax.random.uniform(ks[10], (L,), jnp.float32, 0.5, 1.5),
        bn2_b=0.1 * jax.random.normal(ks[11], (L,), jnp.float32),
        bn2_rm=0.1 * jax.random.normal(ks[12], (L,), jnp.float32),
        bn2_rv=jax.random.uniform(ks[13], (L,), jnp.float32, 0.5, 1.5),
    )


if __name__ == "__main__":
    B, LATENT_DIM, TARGET_DIM = 8, 32, 1

    key = jax.random.PRNGKey(0)
    k_param, k_z, k_t, k_i = jax.random.split(key, 4)

    params = init_params(k_param, LATENT_DIM, TARGET_DIM)
    z = jax.random.normal(k_z, (B, LATENT_DIM), jnp.float32)
    prop_target = jax.random.bernoulli(k_t, 0.5, (B,)).astype(jnp.float32)
    prop_idt = jax.random.bernoulli(k_i, 0.7, (B,)).astype(jnp.float32)
    prop_idt = prop_idt.at[0].set(1.0)   # guarantee at least one labeled sample

    result_sig, prop_loss, accuracy = property_predictor_forward(
        z, prop_target, prop_idt, params)
    jax.block_until_ready((result_sig, prop_loss, accuracy))

    assert result_sig.shape == (B,)
    assert jnp.all(jnp.isfinite(result_sig))
    assert jnp.isfinite(prop_loss) and jnp.isfinite(accuracy)

    # Plain-JAX reference of the same eval-mode forward (PyTorch formulation, un-folded BN).
    def ref_forward():
        eps = 1e-5
        h = z @ params["w1"].T + params["b1"]
        h = jnp.where(h >= 0, h, 0.01 * h)
        h = (h - params["bn1_rm"]) / jnp.sqrt(params["bn1_rv"] + eps) * params["bn1_g"] + params["bn1_b"]
        h = h @ params["w2"].T + params["b2"]
        h = jnp.where(h >= 0, h, 0.01 * h)
        h = (h - params["bn2_rm"]) / jnp.sqrt(params["bn2_rv"] + eps) * params["bn2_g"] + params["bn2_b"]
        logits = (h @ params["wl"].T + params["bl"]).reshape(-1)
        sig = jax.nn.sigmoid(logits)
        x, y = sig * prop_idt, prop_target * prop_idt
        bce = -(y * jnp.maximum(jnp.log(x), -100.0)
                + (1.0 - y) * jnp.maximum(jnp.log(1.0 - x), -100.0))
        loss = jnp.sum(bce) / (jnp.sum(prop_idt) + 1e-8)
        mask = prop_idt != 0
        acc = jnp.sum(mask & (prop_target == (sig >= 0.5).astype(jnp.float32))) / jnp.sum(mask)
        return sig, loss, acc

    r_sig, r_loss, r_acc = ref_forward()
    # result_sig tolerance accounts for the EUP approximate-reciprocal sigmoid denom.
    assert jnp.allclose(result_sig, r_sig, atol=5e-3, rtol=5e-3)
    # loss/accuracy use exact logits math; only f32 rounding from BN folding differs.
    assert jnp.allclose(prop_loss, r_loss, atol=1e-4, rtol=1e-3)
    assert jnp.allclose(accuracy, r_acc, atol=1e-6)

    # Exercise the bf16-MXU path (intended for large B); epilogue stays f32.
    bf_sig, bf_loss, bf_acc = property_predictor_forward(
        z, prop_target, prop_idt, params, matmul_dtype=jnp.bfloat16)
    jax.block_until_ready((bf_sig, bf_loss, bf_acc))
    assert jnp.allclose(bf_sig, r_sig, atol=5e-2)
    assert jnp.isfinite(bf_loss) and jnp.isfinite(bf_acc)

    print("KERNEL_OK")
</pallas_src>

<mosaic_0001>
module attributes {stable_mosaic.version = 11 : i64} {
  func.func @_predictor_kernel(%arg0: memref<128x32xf32, #tpu.memory_space<vmem>>, %arg1: memref<64x32xf32, #tpu.memory_space<vmem>>, %arg2: memref<32x64xf32, #tpu.memory_space<vmem>>, %arg3: memref<128x1xf32, #tpu.memory_space<vmem>>, %arg4: memref<1xf32, #tpu.memory_space<smem>>, %arg5: memref<1x128xf32, #tpu.memory_space<vmem>>, %arg6: memref<1x128xf32, #tpu.memory_space<vmem>>, %arg7: memref<1x128xf32, #tpu.memory_space<vmem>>, %arg8: memref<1xf32, #tpu.memory_space<smem>>, %arg9: memref<1xf32, #tpu.memory_space<smem>>) attributes {dimension_semantics = [], scalar_prefetch = 0 : i64, scratch_operands = 0 : i64, tpu.core_type = #tpu.core_type<tc>} {
    %c0 = arith.constant 0 : index
    %c0_0 = arith.constant 0 : index
    %0 = vector.load %arg3[%c0, %c0_0] : memref<128x1xf32, #tpu.memory_space<vmem>>, vector<64x1xf32>
    %c64 = arith.constant 64 : index
    %c0_1 = arith.constant 0 : index
    %1 = vector.load %arg3[%c64, %c0_1] : memref<128x1xf32, #tpu.memory_space<vmem>>, vector<32x1xf32>
    %c96 = arith.constant 96 : index
    %c0_2 = arith.constant 0 : index
    %2 = vector.load %arg3[%c96, %c0_2] : memref<128x1xf32, #tpu.memory_space<vmem>>, vector<32x1xf32>
    %c0_3 = arith.constant 0 : index
    %c0_4 = arith.constant 0 : index
    %3 = vector.load %arg1[%c0_3, %c0_4] : memref<64x32xf32, #tpu.memory_space<vmem>>, vector<64x32xf32>
    %c0_5 = arith.constant 0 : index
    %c0_6 = arith.constant 0 : index
    %4 = vector.load %arg0[%c0_5, %c0_6] : memref<128x32xf32, #tpu.memory_space<vmem>>, vector<128x32xf32>
    %cst = arith.constant dense<0.000000e+00> : vector<64x128xf32>
    %5 = tpu.matmul %3, %4, %cst {dimension_numbers = #tpu.dot_dimension_numbers<[1], [1], [0], [0], [0, 0, 1, 0], [], []>} : vector<64x32xf32>, vector<128x32xf32>, vector<64x128xf32> -> vector<64x128xf32>
    %6 = vector.broadcast %0 : vector<64x1xf32> to vector<64x128xf32>
    %7 = arith.addf %5, %6 : vector<64x128xf32>
    %cst_7 = arith.constant 0.000000e+00 : f32
    %8 = vector.broadcast %cst_7 : f32 to vector<64x128xf32>
    %9 = arith.cmpf oge, %7, %8 : vector<64x128xf32>
    %cst_8 = arith.constant 0.00999999977 : f32
    %10 = vector.broadcast %cst_8 : f32 to vector<64x128xf32>
    %11 = arith.mulf %10, %7 : vector<64x128xf32>
    %12 = arith.select %9, %7, %11 : vector<64x128xi1>, vector<64x128xf32>
    %c0_9 = arith.constant 0 : index
    %c0_10 = arith.constant 0 : index
    %13 = vector.load %arg2[%c0_9, %c0_10] : memref<32x64xf32, #tpu.memory_space<vmem>>, vector<32x64xf32>
    %cst_11 = arith.constant dense<0.000000e+00> : vector<32x128xf32>
    %14 = tpu.matmul %13, %12, %cst_11 {dimension_numbers = #tpu.dot_dimension_numbers<[1], [0], [0], [1], [0, 0, 1, 1], [], []>} : vector<32x64xf32>, vector<64x128xf32>, vector<32x128xf32> -> vector<32x128xf32>
    %15 = vector.broadcast %1 : vector<32x1xf32> to vector<32x128xf32>
    %16 = arith.addf %14, %15 : vector<32x128xf32>
    %cst_12 = arith.constant 0.000000e+00 : f32
    %17 = vector.broadcast %cst_12 : f32 to vector<32x128xf32>
    %18 = arith.cmpf oge, %16, %17 : vector<32x128xf32>
    %cst_13 = arith.constant 0.00999999977 : f32
    %19 = vector.broadcast %cst_13 : f32 to vector<32x128xf32>
    %20 = arith.mulf %19, %16 : vector<32x128xf32>
    %21 = arith.select %18, %16, %20 : vector<32x128xi1>, vector<32x128xf32>
    %22 = vector.broadcast %2 : vector<32x1xf32> to vector<32x128xf32>
    %23 = arith.mulf %21, %22 : vector<32x128xf32>
    %cst_14 = arith.constant dense<0.000000e+00> : vector<128xf32>
    %24 = vector.multi_reduction <add>, %23, %cst_14 [0] : vector<32x128xf32> to vector<128xf32>
    %25 = vector.shape_cast %24 : vector<128xf32> to vector<1x128xf32>
    %c0_15 = arith.constant 0 : index
    %26 = memref.load %arg4[%c0_15] : memref<1xf32, #tpu.memory_space<smem>>
    %27 = vector.broadcast %26 : f32 to vector<1x128xf32>
    %28 = arith.addf %25, %27 : vector<1x128xf32>
    %29 = math.absf %28 : vector<1x128xf32>
    %cst_16 = arith.constant 0.000000e+00 : f32
    %30 = vector.broadcast %cst_16 : f32 to vector<1x128xf32>
    %31 = arith.subf %30, %29 : vector<1x128xf32>
    %32 = math.exp %31 : vector<1x128xf32>
    %cst_17 = arith.constant 1.000000e+00 : f32
    %33 = vector.broadcast %cst_17 : f32 to vector<1x128xf32>
    %34 = arith.addf %33, %32 : vector<1x128xf32>
    %35 = tpu.reciprocal %34 {approx = true} : vector<1x128xf32> -> vector<1x128xf32>
    %cst_18 = arith.constant 0.000000e+00 : f32
    %36 = vector.broadcast %cst_18 : f32 to vector<1x128xf32>
    %37 = arith.cmpf oge, %28, %36 : vector<1x128xf32>
    %38 = arith.mulf %32, %35 : vector<1x128xf32>
    %39 = arith.select %37, %35, %38 : vector<1x128xi1>, vector<1x128xf32>
    %c0_19 = arith.constant 0 : index
    %c0_20 = arith.constant 0 : index
    %40 = vector.load %arg7[%c0_19, %c0_20] : memref<1x128xf32, #tpu.memory_space<vmem>>, vector<1x128xf32>
    tpu.vector_store %arg7[%c0_19, %c0_20], %39 {strides = array<i32>} : memref<1x128xf32, #tpu.memory_space<vmem>>, vector<1x128xf32>,
    %c0_21 = arith.constant 0 : index
    %c0_22 = arith.constant 0 : index
    %41 = vector.load %arg5[%c0_21, %c0_22] : memref<1x128xf32, #tpu.memory_space<vmem>>, vector<1x128xf32>
    %c0_23 = arith.constant 0 : index
    %c0_24 = arith.constant 0 : index
    %42 = vector.load %arg6[%c0_23, %c0_24] : memref<1x128xf32, #tpu.memory_space<vmem>>, vector<1x128xf32>
    %cst_25 = arith.constant 0.000000e+00 : f32
    %43 = vector.broadcast %cst_25 : f32 to vector<1x128xf32>
    %44 = arith.maximumf %28, %43 : vector<1x128xf32>
    %cst_26 = arith.constant 1.000000e+00 : f32
    %45 = vector.broadcast %cst_26 : f32 to vector<1x128xf32>
    %46 = arith.addf %45, %32 : vector<1x128xf32>
    %47 = math.log %46 : vector<1x128xf32>
    %48 = arith.addf %44, %47 : vector<1x128xf32>
    %49 = arith.subf %48, %28 : vector<1x128xf32>
    %cst_27 = arith.constant 1.000000e+02 : f32
    %50 = vector.broadcast %cst_27 : f32 to vector<1x128xf32>
    %51 = arith.minimumf %49, %50 : vector<1x128xf32>
    %52 = arith.mulf %41, %51 : vector<1x128xf32>
    %cst_28 = arith.constant 1.000000e+00 : f32
    %53 = vector.broadcast %cst_28 : f32 to vector<1x128xf32>
    %54 = arith.subf %53, %41 : vector<1x128xf32>
    %cst_29 = arith.constant 1.000000e+02 : f32
    %55 = vector.broadcast %cst_29 : f32 to vector<1x128xf32>
    %56 = arith.minimumf %48, %55 : vector<1x128xf32>
    %57 = arith.mulf %54, %56 : vector<1x128xf32>
    %58 = arith.addf %52, %57 : vector<1x128xf32>
    %59 = arith.mulf %58, %42 : vector<1x128xf32>
    %60 = vector.shape_cast %59 : vector<1x128xf32> to vector<1x1x128xf32>
    %cst_30 = arith.constant dense<0.000000e+00> : vector<1xf32>
    %61 = vector.multi_reduction <add>, %60, %cst_30 [1, 2] : vector<1x1x128xf32> to vector<1xf32>
    %62 = vector.shape_cast %61 : vector<1xf32> to vector<1x1x1xf32>
    %63 = vector.extract %62[0, 0, 0] : f32 from vector<1x1x1xf32>
    %64 = vector.shape_cast %42 : vector<1x128xf32> to vector<1x1x128xf32>
    %cst_31 = arith.constant dense<0.000000e+00> : vector<1xf32>
    %65 = vector.multi_reduction <add>, %64, %cst_31 [1, 2] : vector<1x1x128xf32> to vector<1xf32>
    %66 = vector.shape_cast %65 : vector<1xf32> to vector<1x1x1xf32>
    %67 = vector.extract %66[0, 0, 0] : f32 from vector<1x1x1xf32>
    %cst_32 = arith.constant 9.99999993E-9 : f32
    %68 = arith.addf %67, %cst_32 : f32
    %69 = arith.divf %63, %68 : f32
    %c0_33 = arith.constant 0 : index
    %70 = memref.load %arg8[%c0_33] : memref<1xf32, #tpu.memory_space<smem>>
    memref.store %69, %arg8[%c0_33] : memref<1xf32, #tpu.memory_space<smem>>
    %cst_34 = arith.constant 0.000000e+00 : f32
    %71 = vector.broadcast %cst_34 : f32 to vector<1x128xf32>
    %72 = arith.cmpf one, %42, %71 : vector<1x128xf32>
    %73 = arith.extui %72 : vector<1x128xi1> to vector<1x128xi32>
    %74 = arith.sitofp %73 : vector<1x128xi32> to vector<1x128xf32>
    %cst_35 = arith.constant 5.000000e-01 : f32
    %75 = vector.broadcast %cst_35 : f32 to vector<1x128xf32>
    %76 = arith.cmpf oge, %39, %75 : vector<1x128xf32>
    %77 = arith.extui %76 : vector<1x128xi1> to vector<1x128xi32>
    %78 = arith.sitofp %77 : vector<1x128xi32> to vector<1x128xf32>
    %79 = arith.cmpf oeq, %41, %78 : vector<1x128xf32>
    %80 = arith.extui %79 : vector<1x128xi1> to vector<1x128xi32>
    %81 = arith.sitofp %80 : vector<1x128xi32> to vector<1x128xf32>
    %82 = arith.mulf %74, %81 : vector<1x128xf32>
    %83 = vector.shape_cast %82 : vector<1x128xf32> to vector<1x1x128xf32>
    %cst_36 = arith.constant dense<0.000000e+00> : vector<1xf32>
    %84 = vector.multi_reduction <add>, %83, %cst_36 [1, 2] : vector<1x1x128xf32> to vector<1xf32>
    %85 = vector.shape_cast %84 : vector<1xf32> to vector<1x1x1xf32>
    %86 = vector.extract %85[0, 0, 0] : f32 from vector<1x1x1xf32>
    %87 = vector.shape_cast %74 : vector<1x128xf32> to vector<1x1x128xf32>
    %cst_37 = arith.constant dense<0.000000e+00> : vector<1xf32>
    %88 = vector.multi_reduction <add>, %87, %cst_37 [1, 2] : vector<1x1x128xf32> to vector<1xf32>
    %89 = vector.shape_cast %88 : vector<1xf32> to vector<1x1x1xf32>
    %90 = vector.extract %89[0, 0, 0] : f32 from vector<1x1x1xf32>
    %91 = arith.divf %86, %90 : f32
    %c0_38 = arith.constant 0 : index
    %92 = memref.load %arg9[%c0_38] : memref<1xf32, #tpu.memory_space<smem>>
    memref.store %91, %arg9[%c0_38] : memref<1xf32, #tpu.memory_space<smem>>
    return
  }
}

</mosaic_0001>

<bundles_post_ra>
// kernel: tpu_custom_call.1
= control target key start
LH: loop header
LB: loop body
LE: loop exit
PB: predicated region body
PF: predicated region fallthrough
CT: control target
= control target key end

     0   :  { %16 = vsyncpa [#allocation4], 0  ;;  %s944_s0 = inlined_call_operand.vmem [shape: f32[128,32], index: 0, kind: input, shape index: {}]   ;;  %s945_s1 = inlined_call_operand.vmem [shape: f32[64,32], index: 1, kind: input, shape index: {}]   ;;  %s946_s2 = inlined_call_operand.vmem [shape: f32[32,64], index: 2, kind: input, shape index: {}]   ;;  %s947_s3 = inlined_call_operand.vmem [shape: f32[128,1], index: 3, kind: input, shape index: {}]   ;;  %s948_s4 = inlined_call_operand.<no memory space> [shape: f32[1], index: 4, kind: input, shape index: {}]   ;;  %s949_s5 = inlined_call_operand.vmem [shape: f32[1,128], index: 5, kind: input, shape index: {}]   ;;  %s950_s6 = inlined_call_operand.vmem [shape: f32[1,128], index: 6, kind: input, shape index: {}]   ;;  %s951_s7 = inlined_call_operand.hbm [shape: f32[1,128], index: 7, kind: output, shape index: {0}]   ;;  %s952_s8 = inlined_call_operand.hbm [shape: f32[1], index: 8, kind: output, shape index: {1}]   ;;  %s953_s9 = inlined_call_operand.hbm [shape: f32[1], index: 9, kind: output, shape index: {2}]  }
   0x1   :  { %17 = vsyncpa [#allocation5], 0  ;;  %v72_v0 = vld [vmem:[%s944_s0 + $0x78] sm:$0xff]  ;;  %vm113_vm0 = vcmask 261120   ;;  %v71_v1 = vld [vmem:[%s944_s0 + $0x70] sm:$0xff] }
   0x2   :  { %556 = vmatpush.xpose.msk.msra.mxu3 %vm113_vm0, %v72_v0  ;;  %555 = vmatpush.xpose.msk.msra.mxu2 %vm113_vm0, %v72_v0 }
   0x3   :  { %524 = vmatpush.xpose.msk.msra.mxu0 %vm113_vm0, %v72_v0 }
   0x4   :  { %18 = vsyncpa [#allocation8], 0  ;;  %v70_v2 = vld [vmem:[%s944_s0 + $0x68] sm:$0xff]  ;;  %v69_v3 = vld [vmem:[%s944_s0 + $0x60] sm:$0xff]  ;;  %v671_v11 = vmov 0   ;;  %vm275_vm9 = vcmask 523264  }
   0x5   :  { %v68_v4 = vld [vmem:[%s944_s0 + $0x58] sm:$0xff]  ;;  %v67_v5 = vld [vmem:[%s944_s0 + $0x50] sm:$0xff]  ;;  %v66_v6 = vld [vmem:[%s944_s0 + $0x48] sm:$0xff]  ;;  %604 = vset.pattern.permute.xlu0 %v671_v11  ;;  %605 = vset.pattern.permute.xlu1 %v671_v11  ;;  %vm389_vm10 = vcmask 1040384   ;;  %s673_s14 = smov [#allocation3]   ;;  %s486_s17 = sshll.u32 %s951_s7, 4  ;;  %s487_s17 = int_to_ptr.hbm [resolvable:$true] %s486_s17 }
   0x6   :  { %558 = vmatpush.xpose.msk.msra.mxu3 %vm113_vm0, %v71_v1  ;;  %557 = vmatpush.xpose.msk.msra.mxu2 %vm113_vm0, %v71_v1  ;;  %v65_v7 = vld [vmem:[%s944_s0 + $0x40] sm:$0xff]  ;;  %v64_v8 = vld [vmem:[%s944_s0 + $0x38] sm:$0xff]  ;;  %v63_v10 = vld [vmem:[%s944_s0 + $0x30] sm:$0xff]  ;;  %s484_s15 = sshll.u32 %s673_s14, 4  ;;  %s495_s19 = sshll.u32 %s952_s8, 4  ;;  %s485_s15 = int_to_ptr.vmem [resolvable:$true] %s484_s15  ;;  %s496_s19 = int_to_ptr.hbm [resolvable:$true] %s495_s19 }
   0x7   :  { %525 = vmatpush.xpose.msk.msra.mxu0 %vm113_vm0, %v71_v1  ;;  %v40_v9 = vld [vmem:[%s947_s3 + $0x38] sm:$0xff]  ;;  %606 = vset.pattern.permute.xlu2 %v671_v11  ;;  %v62_v12 = vld [vmem:[%s944_s0 + $0x28] sm:$0xff]  ;;  %v39_v13 = vld [vmem:[%s947_s3 + $0x30] sm:$0xff]  ;;  %s504_s24 = sshll.u32 %s953_s9, 4  ;;  %s675_s27 = smov [#allocation7]   ;;  %s505_s24 = int_to_ptr.hbm [resolvable:$true] %s504_s24 }
   0x8   :  { %110 = vperm.xlu0 %604, %v40_v9   ;;  %v38_v14 = vld [vmem:[%s947_s3 + $0x28] sm:$0xff]  ;;  %v61_v15 = vld [vmem:[%s944_s0 + $0x20] sm:$0xff]  ;;  %v60_v16 = vld [vmem:[%s944_s0 + $0x18] sm:$0xff] }
   0x9   :  { %100 = vperm.xlu1 %605, %v38_v14   ;;  %v34_v17 = vld [vmem:[%s947_s3 + $0x8] sm:$0xff]  ;;  %v37_v18 = vld [vmem:[%s947_s3 + $0x20] sm:$0xff]  ;;  %v59_v19 = vld [vmem:[%s944_s0 + $0x10] sm:$0xff] }
   0xa   :  { %560 = vmatpush.xpose.msk.msra.mxu3 %vm113_vm0, %v70_v2  ;;  %559 = vmatpush.xpose.msk.msra.mxu2 %vm113_vm0, %v70_v2  ;;  %v58_v20 = vld [vmem:[%s944_s0 + $0x8] sm:$0xff]  ;;  %v33_v22 = vld [vmem:[%s947_s3] sm:$0xff]  ;;  %v52_v24 = vld [vmem:[%s945_s1 + $0x18] sm:$0xff] }
   0xb   :  { %526 = vmatpush.xpose.msk.msra.mxu0 %vm113_vm0, %v70_v2  ;;  %v42_v21 = vld [vmem:[%s947_s3 + $0x48] sm:$0xff]  ;;  %v57_v23 = vld [vmem:[%s944_s0] sm:$0xff]  ;;  %v43_v28 = vld [vmem:[%s947_s3 + $0x50] sm:$0xff] }
   0xc   :  { %v50_v25 = vld [vmem:[%s945_s1 + $0x8] sm:$0xff]  ;;  %v49_v26 = vld [vmem:[%s945_s1] sm:$0xff]  ;;  %v36_v29 = vld [vmem:[%s947_s3 + $0x18] sm:$0xff] }
   0xd   :  { %v45_v27 = vld [vmem:[%s947_s3 + $0x60] sm:$0xff]  ;;  %90 = vperm.xlu2 %606, %v36_v29   ;;  %v51_v31 = vld [vmem:[%s945_s1 + $0x10] sm:$0xff]  ;;  %v46_v32 = vld [vmem:[%s947_s3 + $0x68] sm:$0xff] }
   0xe   :  { %562 = vmatpush.xpose.msk.msra.mxu3 %vm113_vm0, %v69_v3  ;;  %561 = vmatpush.xpose.msk.msra.mxu2 %vm113_vm0, %v69_v3  ;;  %v53_v30 = vld [vmem:[%s945_s1 + $0x20] sm:$0xff]  ;;  %v35_v33 = vld [vmem:[%s947_s3 + $0x10] sm:$0xff]  ;;  %v48_v34 = vld [vmem:[%s947_s3 + $0x78] sm:$0xff] }
   0xf   :  { %527 = vmatpush.xpose.msk.msra.mxu0 %vm113_vm0, %v69_v3  ;;  %v54_v35 = vld [vmem:[%s945_s1 + $0x28] sm:$0xff]  ;;  %v41_v36 = vld [vmem:[%s947_s3 + $0x40] sm:$0xff]  ;;  %v55_v37 = vld [vmem:[%s945_s1 + $0x30] sm:$0xff] }
  0x10   :  { %105 = vperm.xlu0 %604, %v39_v13   ;;  %v44_v38 = vld [vmem:[%s947_s3 + $0x58] sm:$0xff]  ;;  %v47_v40 = vld [vmem:[%s947_s3 + $0x70] sm:$0xff] }
  0x11   :  { %95 = vperm.xlu1 %605, %v37_v18   ;;  %v56_v39 = vld [vmem:[%s945_s1 + $0x38] sm:$0xff]  ;;  %v252_v18 = vld [vmem:[%s946_s2 + $0x8] sm:$0xff]  ;;  %s674_s1 = smov [#allocation6]  }
  0x12   :  { %564 = vmatpush.xpose.msk.msra.mxu3 %vm113_vm0, %v68_v4  ;;  %563 = vmatpush.xpose.msk.msra.mxu2 %vm113_vm0, %v68_v4 }
  0x13   :  { %528 = vmatpush.xpose.msk.msra.mxu0 %vm113_vm0, %v68_v4 }
  0x15   :  { %85 = vperm.xlu2 %606, %v35_v33  }
  0x16   :  { %566 = vmatpush.xpose.msk.msra.mxu3 %vm113_vm0, %v67_v5  ;;  %565 = vmatpush.xpose.msk.msra.mxu2 %vm113_vm0, %v67_v5 }
  0x17   :  { %529 = vmatpush.xpose.msk.msra.mxu0 %vm113_vm0, %v67_v5 }
  0x18   :  { %80 = vperm.xlu0 %604, %v34_v17  }
  0x19   :  { %75 = vperm.xlu1 %605, %v33_v22  }
  0x1a   :  { %568 = vmatpush.xpose.msk.msra.mxu3 %vm113_vm0, %v66_v6  ;;  %567 = vmatpush.xpose.msk.msra.mxu2 %vm113_vm0, %v66_v6 }
  0x1b   :  { %530 = vmatpush.xpose.msk.msra.mxu0 %vm113_vm0, %v66_v6 }
  0x1d   :  { %257 = vperm.xlu2 %606, %v41_v36  }
  0x1e   :  { %570 = vmatpush.xpose.msk.msra.mxu3 %vm113_vm0, %v65_v7  ;;  %569 = vmatpush.xpose.msk.msra.mxu2 %vm113_vm0, %v65_v7 }
  0x1f   :  { %531 = vmatpush.xpose.msk.msra.mxu0 %vm113_vm0, %v65_v7 }
  0x20   :  { %262 = vperm.xlu0 %604, %v42_v21  }
  0x21   :  { %267 = vperm.xlu1 %605, %v43_v28  }
  0x22   :  { %572 = vmatpush.xpose.msk.msra.mxu3 %vm113_vm0, %v64_v8  ;;  %571 = vmatpush.xpose.msk.msra.mxu2 %vm113_vm0, %v64_v8 }
  0x23   :  { %532 = vmatpush.xpose.msk.msra.mxu0 %vm113_vm0, %v64_v8 }
  0x25   :  { %272 = vperm.xlu2 %606, %v44_v38  }
  0x26   :  { %574 = vmatpush.xpose.msk.msra.mxu3 %vm113_vm0, %v63_v10  ;;  %573 = vmatpush.xpose.msk.msra.mxu2 %vm113_vm0, %v63_v10 }
  0x27   :  { %533 = vmatpush.xpose.msk.msra.mxu0 %vm113_vm0, %v63_v10 }
  0x28   :  { %331 = vperm.xlu0 %604, %v45_v27   ;;  %v917_v27 = vld [vmem:[%s950_s6] sm:$0x1] }
  0x29   :  { %336 = vperm.xlu1 %605, %v46_v32   ;;  %vm430_vm15 = vcmp.ne.f32.partialorder %v917_v27, 0.0 }
  0x2a   :  { %576 = vmatpush.xpose.msk.msra.mxu3 %vm113_vm0, %v62_v12  ;;  %575 = vmatpush.xpose.msk.msra.mxu2 %vm113_vm0, %v62_v12 }
  0x2b   :  { %534 = vmatpush.xpose.msk.msra.mxu0 %vm113_vm0, %v62_v12 }
  0x2d   :  { %341 = vperm.xlu2 %606, %v47_v40  }
  0x2e   :  { %578 = vmatpush.xpose.msk.msra.mxu3 %vm113_vm0, %v61_v15  ;;  %577 = vmatpush.xpose.msk.msra.mxu2 %vm113_vm0, %v61_v15 }
  0x2f   :  { %535 = vmatpush.xpose.msk.msra.mxu0 %vm113_vm0, %v61_v15 }
  0x30   :  { %346 = vperm.xlu0 %604, %v48_v34  }
  0x32   :  { %580 = vmatpush.xpose.msk.msra.mxu3 %vm113_vm0, %v60_v16  ;;  %579 = vmatpush.xpose.msk.msra.mxu2 %vm113_vm0, %v60_v16 }
  0x33   :  { %536 = vmatpush.xpose.msk.msra.mxu0 %vm113_vm0, %v60_v16  ;;  %v251_v16 = vld [vmem:[%s946_s2] sm:$0xff] }
  0x36   :  { %582 = vmatpush.xpose.msk.msra.mxu3 %vm113_vm0, %v59_v19  ;;  %581 = vmatpush.xpose.msk.msra.mxu2 %vm113_vm0, %v59_v19 }
  0x37   :  { %537 = vmatpush.xpose.msk.msra.mxu0 %vm113_vm0, %v59_v19  ;;  %v253_v19 = vld [vmem:[%s946_s2 + $0x10] sm:$0xff] }
  0x3a   :  { %584 = vmatpush.xpose.msk.msra.mxu3 %vm113_vm0, %v58_v20  ;;  %583 = vmatpush.xpose.msk.msra.mxu2 %vm113_vm0, %v58_v20 }
  0x3b   :  { %538 = vmatpush.xpose.msk.msra.mxu0 %vm113_vm0, %v58_v20  ;;  %v254_v20 = vld [vmem:[%s946_s2 + $0x18] sm:$0xff] }
  0x3e   :  { %586 = vmatpush.xpose.msk.msra.mxu3 %vm113_vm0, %v57_v23  ;;  %585 = vmatpush.xpose.msk.msra.mxu2 %vm113_vm0, %v57_v23 }
  0x3f   :  { %539 = vmatpush.xpose.msk.msra.mxu0 %vm113_vm0, %v57_v23 }
  0x41   :  { %543 = vmatmul.msk.f32.vlgmr.msra.gmra.mxu3 %vm113_vm0, %v52_v24  ;;  %541 = vmatmul.msk.f32.vlgmr.msra.gmra.mxu2 %vm113_vm0, %v50_v25 }
  0x42   :  { %540 = vmatmul.msk.f32.vlgmr.msra.gmra.mxu0 %vm113_vm0, %v49_v26 }
  0x49   :  { %544 = vmatmul.msk.f32.gmra.mxu3 %vm113_vm0, %v53_v30  ;;  %542 = vmatmul.msk.f32.gmra.mxu2 %vm113_vm0, %v51_v31  ;;  %v400_v30 = vsel %vm389_vm10, %v917_v27, 0.0 }
  0x51   :  { %545 = vmatmul.msk.f32.gmra.mxu3 %vm113_vm0, %v54_v35 }
  0x56   :  { %401 = vadd.xlane.f32.xlu2 %v400_v30 }
  0x59   :  { %546 = vmatmul.msk.f32.gmra.mxu3 %vm113_vm0, %v55_v37 }
  0x61   :  { %547 = vmatmul.msk.f32.gmra.mxu3 %vm113_vm0, %v56_v39 }
  0x67   :  { %v91_v49 = vpop.permute.xlu2 %90 }
  0x6f   :  { %v86_v62 = vpop.permute.xlu2 %85 }
  0x77   :  { %v258_v22 = vpop.permute.xlu2 %257 }
  0x7a   :  { %v111_v44 = vpop.permute.xlu0 %110 }
  0x7b   :  { %v101_v45 = vpop.permute.xlu1 %100 }
  0x7f   :  { %v273_v28 = vpop.permute.xlu2 %272 }
  0x82   :  { %v106_v48 = vpop.permute.xlu0 %105 }
  0x83   :  { %v96_v51 = vpop.permute.xlu1 %95 }
  0x8a   :  { %v81_v2 = vpop.permute.xlu0 %80 }
  0x8b   :  { %v76_v7 = vpop.permute.xlu1 %75 }
  0x92   :  { %v263_v24 = vpop.permute.xlu0 %262 }
  0x93   :  { %v268_v25 = vpop.permute.xlu1 %267 }
  0x9a   :  { %v332_v34 = vpop.permute.xlu0 %331 }
  0x9b   :  { %v337_v38 = vpop.permute.xlu1 %336 }
  0xbf   :  { %v203_v3 = vpop.f32.mrf.mxu0 }
  0xc0   :  { %v204_v8 = vadd.f32 %v203_v3, %v76_v7 }
  0xc2   :  { %v235_v14 = vmul.f32 0.01, %v204_v8  ;;  %vm227_vm8 = vcmp.ge.f32.partialorder %v204_v8, 0.0 }
  0xc4   :  { %v212_v41 = vpop.f32.mrf.mxu3  ;;  %v206_v47 = vpop.f32.mrf.mxu2  ;;  %v243_v17 = vsel %vm227_vm8, %v204_v8, %v235_v14 }
  0xc5   :  { %v213_v59 = vadd.f32 %v212_v41, %v91_v49  ;;  %v207_v4 = vadd.f32 %v206_v47, %v81_v2  ;;  %v347_v49 = vpop.permute.xlu0 %346 }
  0xc7   :  { %v238_v6 = vmul.f32 0.01, %v213_v59  ;;  %vm230_vm5 = vcmp.ge.f32.partialorder %v213_v59, 0.0  ;;  %v236_v12 = vmul.f32 0.01, %v207_v4  ;;  %vm228_vm7 = vcmp.ge.f32.partialorder %v207_v4, 0.0 }
  0xc9   :  { %v246_v11 = vsel %vm230_vm5, %v213_v59, %v238_v6  ;;  %v244_v15 = vsel %vm228_vm7, %v207_v4, %v236_v12  ;;  %v363_v59 = vstv %s948_s4  ;;  %v375_v12 = vld [vmem:[%s949_s5] sm:$0x1] }
  0xcc   :  { %v215_v42 = vpop.f32.mrf.mxu3  ;;  %v209_v58 = vpop.f32.mrf.mxu2 }
  0xcd   :  { %v216_v55 = vadd.f32 %v215_v42, %v96_v51  ;;  %v210_v63 = vadd.f32 %v209_v58, %v86_v62 }
  0xcf   :  { %v239_v1 = vmul.f32 0.01, %v216_v55  ;;  %vm231_vm4 = vcmp.ge.f32.partialorder %v216_v55, 0.0  ;;  %v237_v10 = vmul.f32 0.01, %v210_v63  ;;  %vm229_vm6 = vcmp.ge.f32.partialorder %v210_v63, 0.0 }
  0xd1   :  { %v247_v9 = vsel %vm231_vm4, %v216_v55, %v239_v1  ;;  %v245_v13 = vsel %vm229_vm6, %v210_v63, %v237_v10  ;;  %v672_v1 = vmov 0.0  }
  0xd2   :  { %v552_v2 = vsel %vm430_vm15, 1.0, %v672_v1 }
  0xd3   :  { %v450_v3 = vsel %vm389_vm10, %v552_v2, 0.0 }
  0xd4   :  { %v218_v43 = vpop.f32.mrf.mxu3  ;;  %451 = vadd.xlane.f32.xlu2 %v450_v3 }
  0xd5   :  { %v219_v53 = vadd.f32 %v218_v43, %v101_v45  ;;  %v342_v43 = vpop.permute.xlu2 %341 }
  0xd7   :  { %v240_v61 = vmul.f32 0.01, %v219_v53  ;;  %vm232_vm3 = vcmp.ge.f32.partialorder %v219_v53, 0.0 }
  0xd9   :  { %v248_v5 = vsel %vm232_vm3, %v219_v53, %v240_v61 }
  0xdc   :  { %v221_v46 = vpop.f32.mrf.mxu3 }
  0xdd   :  { %v222_v50 = vadd.f32 %v221_v46, %v106_v48 }
  0xdf   :  { %v241_v57 = vmul.f32 0.01, %v222_v50  ;;  %vm233_vm2 = vcmp.ge.f32.partialorder %v222_v50, 0.0 }
  0xe1   :  { %v249_v0 = vsel %vm233_vm2, %v222_v50, %v241_v57 }
  0xe4   :  { %v224_v52 = vpop.f32.mrf.mxu3 }
  0xe5   :  { %v225_v54 = vadd.f32 %v224_v52, %v111_v44 }
  0xe7   :  { %vm234_vm1 = vcmp.ge.f32.partialorder %v225_v54, 0.0  ;;  %v242_v56 = vmul.f32 0.01, %v225_v54 }
  0xe9   :  { %v250_v60 = vsel %vm234_vm1, %v225_v54, %v242_v56 }
  0xea   :  { %296 = vmatpush.msra.mxu1 %v250_v60 }
  0xec   :  { %297 = vmatpush.msra.mxu1 %v249_v0 }
  0xee   :  { %298 = vmatpush.msra.mxu1 %v248_v5 }
  0xf0   :  { %299 = vmatpush.msra.mxu1 %v247_v9 }
  0xf2   :  { %300 = vmatpush.msra.mxu1 %v246_v11 }
  0xf4   :  { %301 = vmatpush.msra.mxu1 %v245_v13 }
  0xf6   :  { %302 = vmatpush.msra.mxu1 %v244_v15 }
  0xf8   :  { %303 = vmatpush.msra.mxu1 %v243_v17 }
  0xf9   :  { %548 = vmatmul.msk.f32.vlgmr.msra.gmra.mxu1 %vm275_vm9, %v251_v16  ;;  %v384_v16 = vsub.f32 1.0, %v375_v12 }
 0x101   :  { %549 = vmatmul.msk.f32.gmra.mxu1 %vm275_vm9, %v252_v18 }
 0x109   :  { %550 = vmatmul.msk.f32.gmra.mxu1 %vm275_vm9, %v253_v19 }
 0x111   :  { %551 = vmatmul.msk.f32.gmra.mxu1 %vm275_vm9, %v254_v20 }
 0x176   :  { %v305_v21 = vpop.f32.mrf.mxu1 }
 0x177   :  { %v306_v29 = vadd.f32 %v305_v21, %v258_v22 }
 0x179   :  { %v321_v35 = vmul.f32 0.01, %v306_v29  ;;  %vm317_vm12 = vcmp.ge.f32.partialorder %v306_v29, 0.0 }
 0x17b   :  { %v325_v39 = vsel %vm317_vm12, %v306_v29, %v321_v35 }
 0x17c   :  { %v349_v45 = vmul.f32 %v332_v34, %v325_v39 }
 0x17e   :  { %v308_v23 = vpop.f32.mrf.mxu1 }
 0x17f   :  { %v309_v26 = vadd.f32 %v308_v23, %v263_v24 }
 0x181   :  { %v322_v32 = vmul.f32 0.01, %v309_v26  ;;  %vm318_vm11 = vcmp.ge.f32.partialorder %v309_v26, 0.0 }
 0x183   :  { %v326_v37 = vsel %vm318_vm11, %v309_v26, %v322_v32 }
 0x184   :  { %v350_v41 = vmul.f32 %v337_v38, %v326_v37 }
 0x186   :  { %v311_v31 = vpop.f32.mrf.mxu1  ;;  %v353_v48 = vadd.f32 %v350_v41, %v349_v45 }
 0x187   :  { %v312_v33 = vadd.f32 %v311_v31, %v268_v25 }
 0x189   :  { %v323_v36 = vmul.f32 0.01, %v312_v33  ;;  %vm319_vm13 = vcmp.ge.f32.partialorder %v312_v33, 0.0 }
 0x18b   :  { %v327_v40 = vsel %vm319_vm13, %v312_v33, %v323_v36 }
 0x18c   :  { %v351_v46 = vmul.f32 %v342_v43, %v327_v40 }
 0x18e   :  { %v314_v42 = vpop.f32.mrf.mxu1  ;;  %v354_v51 = vadd.f32 %v353_v48, %v351_v46 }
 0x18f   :  { %v315_v44 = vadd.f32 %v314_v42, %v273_v28  ;;  %v402_v28 = vpop.xlane.xlu2 %401 }
 0x190   :  { %v403_v29 = vrot.slane %v402_v28, 4 }
 0x191   :  { %vm320_vm14 = vcmp.ge.f32.partialorder %v315_v44, 0.0  ;;  %v324_v47 = vmul.f32 0.01, %v315_v44 }
 0x192   :  { %v404_v30 = vadd.f32 %v403_v29, %v402_v28 }
 0x193   :  { %v328_v50 = vsel %vm320_vm14, %v315_v44, %v324_v47 }
 0x194   :  { %v352_v52 = vmul.f32 %v347_v49, %v328_v50  ;;  %v405_v31 = vrot.slane %v404_v30, 2 }
 0x196   :  { %v355_v53 = vadd.f32 %v354_v51, %v352_v52  ;;  %v406_v35 = vadd.f32 %v405_v31, %v404_v30 }
 0x197   :  { %v452_v42 = vpop.xlane.xlu2 %451 }
 0x198   :  { %v356_v54 = vrot.slane %v355_v53, 4  ;;  %v407_v38 = vrot.slane %v406_v35, 1  ;;  %v453_v44 = vrot.slane %v452_v42, 4 }
 0x19a   :  { %v357_v55 = vadd.f32 %v356_v54, %v355_v53  ;;  %v408_v41 = vadd.f32 %v407_v38, %v406_v35  ;;  %v454_v47 = vadd.f32 %v453_v44, %v452_v42 }
 0x19c   :  { %v358_v56 = vrot.slane %v357_v55, 2  ;;  %v455_v49 = vrot.slane %v454_v47, 2 }
 0x19e   :  { %v359_v57 = vadd.f32 %v358_v56, %v357_v55  ;;  %v456_v54 = vadd.f32 %v455_v49, %v454_v47 }
 0x1a0   :  { %v360_v58 = vrot.slane %v359_v57, 1 }
 0x1a2   :  { %v361_v60 = vadd.f32 %v360_v58, %v359_v57 }
 0x1a4   :  { %v364_v61 = vadd.f32 %v363_v59, %v361_v60  ;;  %v457_v60 = vrot.slane %v456_v54, 1 }
 0x1a6   :  { %v365_v62 = vand.u32 2147483647, %v364_v61  ;;  %vm371_vm0 = vcmp.ge.f32.partialorder %v364_v61, 0.0  ;;  %v377_v9 = vmax.f32 %v364_v61, 0.0 }
 0x1a8   :  { %v366_v63 = vsub.f32 0.0, %v365_v62 }
 0x1aa   :  { %v367_v0 = vmul.f32 1.442695, %v366_v63 }
 0x1ac   :  { %607 = vpow2.f32 %v367_v0 }
 0x1b2   :  { %v608_v4 = vpop.eup %607 }
 0x1b3   :  { %v369_v5 = vadd.f32 1.0, %v608_v4 }
 0x1b5   :  { %609 = vrcp.f32 %v369_v5 }
 0x1b6   :  { %611 = vlog2.f32 %v369_v5 }
 0x1bb   :  { %v610_v6 = vpop.eup %609 }
 0x1bc   :  { %v612_v7 = vpop.eup %611  ;;  %v372_v8 = vmul.f32 %v610_v6, %v608_v4 }
 0x1bd   :  { %v379_v10 = vmul.f32 0.6931472, %v612_v7 }
 0x1be   :  { %v373_v11 = vsel %vm371_vm0, %v610_v6, %v372_v8 }
 0x1bf   :  { %vm433_vm1 = vcmp.ge.f32.partialorder %v373_v11, 0.5  ;;  %374 = vst [vmem:[#allocation3] sm:$0x1] %v373_v11  ;;  %v380_v13 = vadd.f32 %v379_v10, %v377_v9 }
 0x1c0   :  { %v553_v14 = vsel %vm433_vm1, 1.0, %v672_v1  ;;  %489 = dma.vmem_to_hbm [thread:$0]  %s485_s15, 16, %s487_s17, [#allocation4]  }
 0x1c1   :  { %vm436_vm2 = vcmp.eq.f32.partialorder %v375_v12, %v553_v14  ;;  %v381_v15 = vsub.f32 %v380_v13, %v364_v61  ;;  %v385_v17 = vmin.f32 %v380_v13, 100.0 }
 0x1c2   :  { %v554_v18 = vsel %vm436_vm2, 1.0, %v672_v1  ;;  %v458_v1 = vadd.f32 %v457_v60, %v456_v54 }
 0x1c3   :  { %v439_v19 = vmul.f32 %v554_v18, %v552_v2  ;;  %v382_v20 = vmin.f32 %v381_v15, 100.0  ;;  %v386_v23 = vmul.f32 %v385_v17, %v384_v16 }
 0x1c5   :  { %v440_v21 = vsel %vm389_vm10, %v439_v19, 0.0  ;;  %v383_v22 = vmul.f32 %v382_v20, %v375_v12 }
 0x1c6   :  { %441 = vadd.xlane.f32.xlu0 %v440_v21 }
 0x1c7   :  { %v387_v24 = vadd.f32 %v386_v23, %v383_v22 }
 0x1c9   :  { %v388_v25 = vmul.f32 %v387_v24, %v917_v27 }
 0x1cb   :  { %v390_v26 = vsel %vm389_vm10, %v388_v25, 0.0 }
 0x1cc   :  { %391 = vadd.xlane.f32.xlu1 %v390_v26 }
 0x239   :  { %v442_v27 = vpop.xlane.xlu0 %441 }
 0x23a   :  { %v443_v43 = vrot.slane %v442_v27, 4 }
 0x23c   :  { %v444_v46 = vadd.f32 %v443_v43, %v442_v27 }
 0x23e   :  { %v445_v48 = vrot.slane %v444_v46, 2 }
 0x23f   :  { %v392_v32 = vpop.xlane.xlu1 %391 }
 0x240   :  { %v393_v33 = vrot.slane %v392_v32, 4  ;;  %v446_v52 = vadd.f32 %v445_v48, %v444_v46 }
 0x242   :  { %v394_v34 = vadd.f32 %v393_v33, %v392_v32  ;;  %v447_v58 = vrot.slane %v446_v52, 1 }
 0x244   :  { %v395_v36 = vrot.slane %v394_v34, 2  ;;  %v448_v0 = vadd.f32 %v447_v58, %v446_v52 }
 0x246   :  { %v396_v37 = vadd.f32 %v395_v36, %v394_v34 }
 0x248   :  { %v397_v39 = vrot.slane %v396_v37, 1 }
 0x24a   :  { %v398_v40 = vadd.f32 %v397_v39, %v396_v37 }
 0x24c   :  { %587 = vpush %v398_v40 }
 0x24d   :  { %589 = vpush %v408_v41 }
 0x27d   :  { %s932_s5 = spop %587 }
 0x27e   :  { %s590_s12 = spop %589 }
 0x27f   :  { %s410_s13 = sadd.f32 1e-08, %s590_s12 }
 0x281   :  { %v411_v45 = vstv %s410_s13 }
 0x282   :  { %613 = vrcp.f32 %v411_v45  ;;  %v423_v55 = vand.u32 2147483648, %v411_v45  ;;  %v421_v57 = vand.u32 2147483647, %v411_v45  ;;  %vm417_vm4 = vweird.f32 %v411_v45 }
 0x284   :  { %v424_v61 = vor.u32 1.1754944e-38, %v423_v55  ;;  %vm422_vm6 = vcmp.eq.f32.partialorder %v421_v57, 8.507059e+37 }
 0x288   :  { %v614_v50 = vpop.eup %613 }
 0x289   :  { %v413_v51 = vmul.f32 %v614_v50, %v411_v45  ;;  %vm418_vm3 = vweird.f32 %v614_v50 }
 0x28a   :  { %vm419_vm5 = vmor %vm417_vm4, %vm418_vm3 }
 0x28b   :  { %v414_v53 = vsub.f32 1.0, %v413_v51 }
 0x28d   :  { %v415_v56 = vmul.f32 %v614_v50, %v414_v53 }
 0x28f   :  { %v416_v59 = vadd.f32 %v614_v50, %v415_v56 }
 0x291   :  { %v420_v62 = vsel %vm419_vm5, %v614_v50, %v416_v59 }
 0x292   :  { %v425_v63 = vsel %vm422_vm6, %v424_v61, %v420_v62 }
 0x293   :  { %591 = vpush %v425_v63 }
 0x294   :  { %593 = vpush %v448_v0 }
 0x295   :  { %595 = vpush %v458_v1 }
 0x2c4   :  { %s592_s20 = spop %591 }
 0x2c5   :  { %s427_s21 = smul.f32 %s592_s20, %s932_s5  ;;  %s594_s22 = spop %593 }
 0x2c6   :  { %s596_s23 = spop %595 }
 0x2c7   :  { %429 = sst [smem:[#allocation6]] %s427_s21  ;;  %v460_v2 = vstv %s596_s23 }
 0x2c8   :  { %615 = vrcp.f32 %v460_v2  ;;  %498 = dma.smem_to_hbm %s674_s1, 16, %s496_s19, [#allocation5]   ;;  %v472_v6 = vand.u32 2147483648, %v460_v2  ;;  %v470_v8 = vand.u32 2147483647, %v460_v2  ;;  %vm466_vm8 = vweird.f32 %v460_v2 }
 0x2ca   :  { %v473_v10 = vor.u32 1.1754944e-38, %v472_v6  ;;  %vm471_vm10 = vcmp.eq.f32.partialorder %v470_v8, 8.507059e+37 }
 0x2ce   :  { %v616_v3 = vpop.eup %615 }
 0x2cf   :  { %v462_v4 = vmul.f32 %v616_v3, %v460_v2  ;;  %vm467_vm7 = vweird.f32 %v616_v3 }
 0x2d0   :  { %vm468_vm9 = vmor %vm466_vm8, %vm467_vm7 }
 0x2d1   :  { %v463_v5 = vsub.f32 1.0, %v462_v4 }
 0x2d3   :  { %v464_v7 = vmul.f32 %v616_v3, %v463_v5 }
 0x2d5   :  { %v465_v9 = vadd.f32 %v616_v3, %v464_v7 }
 0x2d7   :  { %v469_v11 = vsel %vm468_vm9, %v616_v3, %v465_v9 }
 0x2d8   :  { %v474_v12 = vsel %vm471_vm10, %v473_v10, %v469_v11 }
 0x2d9   :  { %597 = vpush %v474_v12 }
 0x30a   :  { %s598_s25 = spop %597 }
 0x30b   :  { %s476_s26 = smul.f32 %s598_s25, %s594_s22 }
 0x30d   :  { %478 = sst [smem:[#allocation7]] %s476_s26 }
 0x30e   :  { %507 = dma.smem_to_hbm %s675_s27, 16, %s505_s24, [#allocation8]  }
 0x30f   :  { %665 = dma.done.wait [#allocation4], 16  }
 0x310   :  { %666 = vsyncadd [#allocation4], 4294967280 }
 0x311   :  { %667 = dma.done.wait [#allocation5], 16  }
 0x312   :  { %668 = vsyncadd [#allocation5], 4294967280 }
 0x313   :  { %669 = dma.done.wait [#allocation8], 16  }
 0x314   :  { %670 = vsyncadd [#allocation8], 4294967280 }
 0x315   :  { %520 = sfence }
 0x316   :  { %521 = vsyncpa [#allocation4], 1 }
 0x317   :  { %522 = vsyncpa [#allocation5], 1 }
 0x318   :  { %523 = vsyncpa [#allocation8], 1 }

</bundles_post_ra>
